<compile_context>
chip_gen: v7x
topology: tpu7x:2x2x1
jax: 0.10.0
libtpu: 0.0.40
codegen_flags: <defaults>
</compile_context>

<pallas_src>
import functools

import jax
import jax.numpy as jnp
from jax import lax
from jax.experimental import pallas as pl
from jax.experimental.pallas import tpu as pltpu

_SMOOTH = 1e-6   # parity with the module __init__; unused in forward
_THRESH = 0.5

_LANE = 128      # vreg lane width
_SUB = 8         # vreg sublane count (f32)


def _round_up(x, m):
    return ((x + m - 1) // m) * m


def _tile_plan():
    """Return (max rows per block, vmem_limit_bytes), generation aware."""
    try:
        vmem_phys = pltpu.get_tpu_info().vmem_capacity_bytes
    except Exception:
        vmem_phys = 64 << 20
    if vmem_phys >= (128 << 20):      # v5e / v6e: 128 MiB physical VMEM
        return 4096, 48 << 20
    return 2048, 32 << 20             # v7x (64 MiB physical) / unknown


def _pixel_hit_kernel(p_ref, t_ref, xor_ref, tar_ref, *,
                      thresh, rows_valid, kt, need_mask):
    # p_ref/t_ref : (TB, TH, 128) tiles, native dtype.
    # xor_ref/tar_ref : (TB, 1, 8, 128) f32 count blocks, VMEM-resident
    #                   across the k (reduction) axis.
    k = pl.program_id(2)
    tb, th, lanes = p_ref.shape

    pm = p_ref[...] > thresh          # compare in native dtype
    tm = t_ref[...] > thresh

    if need_mask:
        # The last row tile of a sample extends past the (rows8,128) slab;
        # the clamped DMA leaves stale data there.  Mask rows >= rows_valid.
        s = pl.program_id(0)
        limit = rows_valid - (s * kt + k) * th
        rmask = lax.broadcasted_iota(jnp.int32, (th, lanes), 0) < limit
        pm = jnp.logical_and(pm, rmask)
        tm = jnp.logical_and(tm, rmask)

    xr = jnp.logical_xor(tm, pm)

    # Partial reduce along the vreg-group axis only: pure VPU adds; the
    # (TB, 8, 128) partials never need a per-tile cross-lane (XLU) reduce.
    tar_part = tm.astype(jnp.float32).reshape(tb, th // _SUB, _SUB, lanes).sum(axis=1)
    xor_part = xr.astype(jnp.float32).reshape(tb, th // _SUB, _SUB, lanes).sum(axis=1)

    @pl.when(k == 0)
    def _init():
        xor_ref[...] = jnp.zeros_like(xor_ref)
        tar_ref[...] = jnp.zeros_like(tar_ref)

    xor_ref[...] += xor_part[:, None]
    tar_ref[...] += tar_part[:, None]


def pixel_hit(predicts, targets, *, thresh=_THRESH, smooth=_SMOOTH,
              max_tile_rows=None, max_batch_block=None):
    """Pallas TPU implementation of PixelHit.forward.

    predicts, targets: (B,1,H,W) or (B,H,W) float arrays (any float dtype).
    Returns: (B,) float32 array of hit-pixel ratios.
    `max_tile_rows` / `max_batch_block` are testing/tuning knobs.
    """
    del smooth  # parity with the PyTorch module: declared but never used.

    def _prep(x):
        if x.ndim == 4:
            x = jnp.squeeze(x, axis=1)
        if not jnp.issubdtype(x.dtype, jnp.floating):
            x = x.astype(jnp.float32)
        return x

    predicts = _prep(predicts)
    targets = _prep(targets)
    assert predicts.shape == targets.shape, (predicts.shape, targets.shape)
    B, H, W = predicts.shape
    N = H * W

    rows = pl.cdiv(N, _LANE)
    rows8 = _round_up(rows, _SUB)
    n_slab = rows8 * _LANE

    def _to_lanes(x):
        # Flatten to a lane-dense (rows8, 128) slab.  Padding (a full HBM
        # copy) only happens when N % 1024 != 0, and then only by < 8 rows;
        # pad value `thresh` is excluded from both masks by the strict '>'.
        x = x.reshape(B, N)
        if n_slab != N:
            x = jnp.pad(x, ((0, 0), (0, n_slab - N)),
                        constant_values=jnp.asarray(thresh, dtype=x.dtype))
        return x.reshape(B, rows8, _LANE)

    p = _to_lanes(predicts)
    t = _to_lanes(targets)

    cap, vmem_limit = _tile_plan()
    if max_tile_rows is not None:
        cap = min(cap, max(_SUB, _round_up(max_tile_rows, _SUB)))

    if rows8 <= cap:
        # Whole sample fits in one tile: batch-block small samples so each
        # grid step processes TB samples (amortizes per-step overhead).
        tile_rows, kt, ns = rows8, 1, 1
        tb = min(B, max(1, cap // rows8))
        if max_batch_block is not None:
            tb = max(1, min(tb, max_batch_block))
    else:
        # Large samples: row-tile the reduction; TB == 1.
        tb = 1
        tile_rows = cap
        kt_total = pl.cdiv(rows8, tile_rows)
        # 2-way row split keeps both v7x TensorCores busy for odd/single B
        # (harmless extra serial loop on v5e/v6e).
        ns = 2 if (B % 2 == 1 and kt_total >= 2 and kt_total % 2 == 0) else 1
        kt = kt_total // ns
    nb = pl.cdiv(B, tb)
    need_mask = (rows8 % tile_rows) != 0

    kernel = functools.partial(_pixel_hit_kernel, thresh=thresh,
                               rows_valid=rows8, kt=kt, need_mask=need_mask)

    in_itemsize = p.dtype.itemsize + t.dtype.itemsize
    cost = pl.CostEstimate(
        flops=6 * B * N,
        transcendentals=0,
        bytes_accessed=B * n_slab * in_itemsize + 2 * B * ns * _SUB * _LANE * 4)

    out_sds = jax.ShapeDtypeStruct((B, ns, _SUB, _LANE), jnp.float32)
    out_spec = pl.BlockSpec((tb, 1, _SUB, _LANE), lambda s, b, k: (b, s, 0, 0))
    in_spec = pl.BlockSpec((tb, tile_rows, _LANE),
                           lambda s, b, k: (b, s * kt + k, 0))

    xor_cnt, tar_cnt = pl.pallas_call(
        kernel,
        out_shape=(out_sds, out_sds),
        grid_spec=pltpu.PrefetchScalarGridSpec(
            num_scalar_prefetch=0,
            grid=(ns, nb, kt),
            in_specs=[in_spec, in_spec],
            out_specs=[out_spec, out_spec],
        ),
        compiler_params=pltpu.CompilerParams(
            dimension_semantics=("parallel", "parallel", "arbitrary"),
            vmem_limit_bytes=vmem_limit,
        ),
        cost_estimate=cost,
    )(p, t)

    n_xor = jnp.sum(xor_cnt, axis=(1, 2, 3))   # sum(xor) per sample
    n_tar = jnp.sum(tar_cnt, axis=(1, 2, 3))   # sum(tm)  per sample
    # NOTE: parity with the PyTorch module -- divides by zero (NaN/Inf) when
    # the target mask is empty; `smooth` is declared but unused upstream.
    return (n_tar - n_xor) / n_tar


def _pixel_hit_reference(predicts, targets, *, thresh=_THRESH):
    # Pure-JAX reference mirroring the PyTorch loop.
    if predicts.ndim == 4:
        predicts = jnp.squeeze(predicts, axis=1)
    if targets.ndim == 4:
        targets = jnp.squeeze(targets, axis=1)
    pm = predicts > thresh
    tm = targets > thresh
    xr = jnp.logical_xor(tm, pm)
    n_tar = jnp.sum(tm, axis=(1, 2)).astype(jnp.float32)
    n_xor = jnp.sum(xr, axis=(1, 2)).astype(jnp.float32)
    return (n_tar - n_xor) / n_tar


if __name__ == "__main__":
    key = jax.random.PRNGKey(0)
    ks = jax.random.split(key, 12)

    # 1) f32 NCHW, tiny image (rows < 8 -> minimal pad, batch-blocked path).
    p1 = jax.random.uniform(ks[0], (2, 1, 16, 16), jnp.float32)
    t1 = jax.random.uniform(ks[1], (2, 1, 16, 16), jnp.float32)
    o1 = jax.block_until_ready(pixel_hit(p1, t1))
    r1 = _pixel_hit_reference(p1, t1)
    assert o1.shape == (2,)
    assert jnp.allclose(o1, r1, atol=1e-5, rtol=1e-5), (o1, r1)

    # 2) bf16 inputs, W not a multiple of 128 (native-dtype compare, pad tail).
    p2 = jax.random.uniform(ks[2], (2, 1, 24, 40), jnp.float32).astype(jnp.bfloat16)
    t2 = jax.random.uniform(ks[3], (2, 1, 24, 40), jnp.float32).astype(jnp.bfloat16)
    o2 = jax.block_until_ready(pixel_hit(p2, t2))
    r2 = _pixel_hit_reference(p2, t2)
    assert jnp.allclose(o2, r2, atol=1e-5, rtol=1e-5), (o2, r2)

    # 3) Force multiple row tiles: exercises the k-axis accumulation path
    #    (grid = (1, 2, 4)).
    p3 = jax.random.uniform(ks[4], (2, 1, 64, 64), jnp.float32)
    t3 = jax.random.uniform(ks[5], (2, 1, 64, 64), jnp.float32)
    o3 = jax.block_until_ready(pixel_hit(p3, t3, max_tile_rows=8))
    r3 = _pixel_hit_reference(p3, t3)
    assert jnp.allclose(o3, r3, atol=1e-5, rtol=1e-5), (o3, r3)

    # 4) Ragged last row tile (in-kernel iota mask path): rows8=24, tile=16.
    p4 = jax.random.uniform(ks[6], (2, 1, 48, 64), jnp.float32)
    t4 = jax.random.uniform(ks[7], (2, 1, 48, 64), jnp.float32)
    o4 = jax.block_until_ready(pixel_hit(p4, t4, max_tile_rows=16))
    r4 = _pixel_hit_reference(p4, t4)
    assert jnp.allclose(o4, r4, atol=1e-5, rtol=1e-5), (o4, r4)

    # 5) Single-sample 2-way row split (v7x dual-TC path): grid = (2, 1, 2).
    p5 = jax.random.uniform(ks[8], (1, 1, 64, 64), jnp.float32)
    t5 = jax.random.uniform(ks[9], (1, 1, 64, 64), jnp.float32)
    o5 = jax.block_until_ready(pixel_hit(p5, t5, max_tile_rows=8))
    r5 = _pixel_hit_reference(p5, t5)
    assert jnp.allclose(o5, r5, atol=1e-5, rtol=1e-5), (o5, r5)

    # 6) Ragged batch block (B=3, two samples per block).
    p6 = jax.random.uniform(ks[10], (3, 1, 16, 16), jnp.float32)
    t6 = jax.random.uniform(ks[11], (3, 1, 16, 16), jnp.float32)
    o6 = jax.block_until_ready(pixel_hit(p6, t6, max_batch_block=2))
    r6 = _pixel_hit_reference(p6, t6)
    assert jnp.allclose(o6, r6, atol=1e-5, rtol=1e-5), (o6, r6)

    # The PyTorch module returns a Python list of per-sample ratios.
    hit_px_list = [float(v) for v in o1]
    assert len(hit_px_list) == 2

    print("KERNEL_OK")
</pallas_src>

<mosaic_0001>
module attributes {stable_mosaic.version = 11 : i64} {
  func.func @_pixel_hit_kernel(%arg0: i32, %arg1: i32, %arg2: i32, %arg3: memref<2x8x128xf32, #tpu.memory_space<vmem>>, %arg4: memref<2x8x128xf32, #tpu.memory_space<vmem>>, %arg5: memref<2x1x8x128xf32, #tpu.memory_space<vmem>>, %arg6: memref<2x1x8x128xf32, #tpu.memory_space<vmem>>) attributes {dimension_semantics = [#tpu.dimension_semantics<parallel>, #tpu.dimension_semantics<parallel>, #tpu.dimension_semantics<arbitrary>], iteration_bounds = array<i64: 1, 1, 1>, scalar_prefetch = 0 : i64, scratch_operands = 0 : i64, tpu.core_type = #tpu.core_type<tc>, window_params = [{transform_indices = @transform_0, window_bounds = array<i64: 2, 8, 128>}, {transform_indices = @transform_1, window_bounds = array<i64: 2, 8, 128>}, {transform_indices = @transform_2, window_bounds = array<i64: 2, 1, 8, 128>}, {transform_indices = @transform_3, window_bounds = array<i64: 2, 1, 8, 128>}]} {
    %c0 = arith.constant 0 : index
    %c0_0 = arith.constant 0 : index
    %c0_1 = arith.constant 0 : index
    %0 = vector.load %arg3[%c0, %c0_0, %c0_1] : memref<2x8x128xf32, #tpu.memory_space<vmem>>, vector<2x8x128xf32>
    %cst = arith.constant 5.000000e-01 : f32
    %1 = vector.broadcast %cst : f32 to vector<2x8x128xf32>
    %2 = arith.cmpf ogt, %0, %1 : vector<2x8x128xf32>
    %c0_2 = arith.constant 0 : index
    %c0_3 = arith.constant 0 : index
    %c0_4 = arith.constant 0 : index
    %3 = vector.load %arg4[%c0_2, %c0_3, %c0_4] : memref<2x8x128xf32, #tpu.memory_space<vmem>>, vector<2x8x128xf32>
    %cst_5 = arith.constant 5.000000e-01 : f32
    %4 = vector.broadcast %cst_5 : f32 to vector<2x8x128xf32>
    %5 = arith.cmpf ogt, %3, %4 : vector<2x8x128xf32>
    %6 = arith.xori %5, %2 : vector<2x8x128xi1>
    %7 = arith.extui %5 : vector<2x8x128xi1> to vector<2x8x128xi32>
    %8 = arith.sitofp %7 : vector<2x8x128xi32> to vector<2x8x128xf32>
    %9 = vector.shape_cast %8 : vector<2x8x128xf32> to vector<2x1x8x128xf32>
    %cst_6 = arith.constant dense<0.000000e+00> : vector<2x8x128xf32>
    %10 = vector.multi_reduction <add>, %9, %cst_6 [1] : vector<2x1x8x128xf32> to vector<2x8x128xf32>
    %11 = arith.extui %6 : vector<2x8x128xi1> to vector<2x8x128xi32>
    %12 = arith.sitofp %11 : vector<2x8x128xi32> to vector<2x8x128xf32>
    %13 = vector.shape_cast %12 : vector<2x8x128xf32> to vector<2x1x8x128xf32>
    %cst_7 = arith.constant dense<0.000000e+00> : vector<2x8x128xf32>
    %14 = vector.multi_reduction <add>, %13, %cst_7 [1] : vector<2x1x8x128xf32> to vector<2x8x128xf32>
    %c0_i32 = arith.constant 0 : i32
    %15 = arith.cmpi eq, %arg2, %c0_i32 : i32
    %16 = arith.extui %15 : i1 to i32
    %c0_i32_8 = arith.constant 0 : i32
    %17 = arith.cmpi ne, %16, %c0_i32_8 : i32
    scf.if %17 {
      %cst_25 = arith.constant 0.000000e+00 : f32
      %26 = vector.broadcast %cst_25 : f32 to vector<2x1x8x128xf32>
      %c0_26 = arith.constant 0 : index
      %c0_27 = arith.constant 0 : index
      %c0_28 = arith.constant 0 : index
      %c0_29 = arith.constant 0 : index
      %27 = vector.load %arg5[%c0_26, %c0_27, %c0_28, %c0_29] : memref<2x1x8x128xf32, #tpu.memory_space<vmem>>, vector<2x1x8x128xf32>
      tpu.vector_store %arg5[%c0_26, %c0_27, %c0_28, %c0_29], %26 {strides = array<i32>} : memref<2x1x8x128xf32, #tpu.memory_space<vmem>>, vector<2x1x8x128xf32>,
      %cst_30 = arith.constant 0.000000e+00 : f32
      %28 = vector.broadcast %cst_30 : f32 to vector<2x1x8x128xf32>
      %c0_31 = arith.constant 0 : index
      %c0_32 = arith.constant 0 : index
      %c0_33 = arith.constant 0 : index
      %c0_34 = arith.constant 0 : index
      %29 = vector.load %arg6[%c0_31, %c0_32, %c0_33, %c0_34] : memref<2x1x8x128xf32, #tpu.memory_space<vmem>>, vector<2x1x8x128xf32>
      tpu.vector_store %arg6[%c0_31, %c0_32, %c0_33, %c0_34], %28 {strides = array<i32>} : memref<2x1x8x128xf32, #tpu.memory_space<vmem>>, vector<2x1x8x128xf32>,
    } else {
    }
    %c0_9 = arith.constant 0 : index
    %c0_10 = arith.constant 0 : index
    %c0_11 = arith.constant 0 : index
    %c0_12 = arith.constant 0 : index
    %18 = vector.load %arg5[%c0_9, %c0_10, %c0_11, %c0_12] : memref<2x1x8x128xf32, #tpu.memory_space<vmem>>, vector<2x1x8x128xf32>
    %19 = vector.shape_cast %14 : vector<2x8x128xf32> to vector<2x1x8x128xf32>
    %20 = arith.addf %18, %19 : vector<2x1x8x128xf32>
    %c0_13 = arith.constant 0 : index
    %c0_14 = arith.constant 0 : index
    %c0_15 = arith.constant 0 : index
    %c0_16 = arith.constant 0 : index
    %21 = vector.load %arg5[%c0_13, %c0_14, %c0_15, %c0_16] : memref<2x1x8x128xf32, #tpu.memory_space<vmem>>, vector<2x1x8x128xf32>
    tpu.vector_store %arg5[%c0_13, %c0_14, %c0_15, %c0_16], %20 {strides = array<i32>} : memref<2x1x8x128xf32, #tpu.memory_space<vmem>>, vector<2x1x8x128xf32>,
    %c0_17 = arith.constant 0 : index
    %c0_18 = arith.constant 0 : index
    %c0_19 = arith.constant 0 : index
    %c0_20 = arith.constant 0 : index
    %22 = vector.load %arg6[%c0_17, %c0_18, %c0_19, %c0_20] : memref<2x1x8x128xf32, #tpu.memory_space<vmem>>, vector<2x1x8x128xf32>
    %23 = vector.shape_cast %10 : vector<2x8x128xf32> to vector<2x1x8x128xf32>
    %24 = arith.addf %22, %23 : vector<2x1x8x128xf32>
    %c0_21 = arith.constant 0 : index
    %c0_22 = arith.constant 0 : index
    %c0_23 = arith.constant 0 : index
    %c0_24 = arith.constant 0 : index
    %25 = vector.load %arg6[%c0_21, %c0_22, %c0_23, %c0_24] : memref<2x1x8x128xf32, #tpu.memory_space<vmem>>, vector<2x1x8x128xf32>
    tpu.vector_store %arg6[%c0_21, %c0_22, %c0_23, %c0_24], %24 {strides = array<i32>} : memref<2x1x8x128xf32, #tpu.memory_space<vmem>>, vector<2x1x8x128xf32>,
    return
  }
  func.func @transform_0(%arg0: i32, %arg1: i32, %arg2: i32) -> (i32, i32, i32) {
    %c1_i32 = arith.constant 1 : i32
    %0 = arith.muli %arg0, %c1_i32 : i32
    %1 = arith.addi %0, %arg2 : i32
    %c0_i32 = arith.constant 0 : i32
    %c0_i32_0 = arith.constant 0 : i32
    return %arg1, %1, %c0_i32 : i32, i32, i32
  }
  func.func @transform_1(%arg0: i32, %arg1: i32, %arg2: i32) -> (i32, i32, i32) {
    %c1_i32 = arith.constant 1 : i32
    %0 = arith.muli %arg0, %c1_i32 : i32
    %1 = arith.addi %0, %arg2 : i32
    %c0_i32 = arith.constant 0 : i32
    %c0_i32_0 = arith.constant 0 : i32
    return %arg1, %1, %c0_i32 : i32, i32, i32
  }
  func.func @transform_2(%arg0: i32, %arg1: i32, %arg2: i32) -> (i32, i32, i32, i32) {
    %c0_i32 = arith.constant 0 : i32
    %c0_i32_0 = arith.constant 0 : i32
    %c0_i32_1 = arith.constant 0 : i32
    return %arg1, %arg0, %c0_i32, %c0_i32_0 : i32, i32, i32, i32
  }
  func.func @transform_3(%arg0: i32, %arg1: i32, %arg2: i32) -> (i32, i32, i32, i32) {
    %c0_i32 = arith.constant 0 : i32
    %c0_i32_0 = arith.constant 0 : i32
    %c0_i32_1 = arith.constant 0 : i32
    return %arg1, %arg0, %c0_i32, %c0_i32_0 : i32, i32, i32, i32
  }
}

</mosaic_0001>

<bundles_post_ra>
// kernel: tpu_custom_call.1
= control target key start
LH: loop header
LB: loop body
LE: loop exit
PB: predicated region body
PF: predicated region fallthrough
CT: control target
= control target key end

     0   :  { %9 = vsyncpa [#allocation3], 0  ;;  %s328_s0 = inlined_call_operand.hbm [shape: f32[2,8,128], index: 0, kind: input, shape index: {}]   ;;  %s329_s1 = inlined_call_operand.hbm [shape: f32[2,8,128], index: 1, kind: input, shape index: {}]   ;;  %s330_s2 = inlined_call_operand.hbm [shape: f32[2,1,8,128], index: 2, kind: output, shape index: {0}]   ;;  %s331_s3 = inlined_call_operand.hbm [shape: f32[2,1,8,128], index: 3, kind: output, shape index: {1}]  }
   0x1   :  { %10 = vsyncpa [#allocation6], 0 }
   0x2   :  { %11 = vsyncpa [#allocation4], 0 }
   0x3   :  { %12 = vsyncpa [#allocation9], 0  ;;  %s234_s12 = smov [#allocation2]   ;;  %s138_s16 = scalar_lea.hbm %s328_s0, 256 }
   0x4   :  { %s21_s13 = sshll.u32 %s234_s12, 4  ;;  %p139_p0 = scmp.ne.s32.totalorder %s328_s0, %s138_s16  ;;  %s22_s13 = int_to_ptr.vmem [resolvable:$true] %s21_s13 }
   0x5   :  { %p142_p1 = scmp.lt.u32.totalorder %s138_s16, %s328_s0 }
   0x7   :  { %p144_p2 = pnand %p142_p1, %p139_p0 }
   0x9   :  { %147 = shalt.err (!%p144_p2)
}
   0xa   :  { %s148_s21 = scalar_lea.vmem %s22_s13, 256  ;;  %p153_p4 = scmp.lt.s32.totalorder %s22_s13, %s22_s13 }
   0xb   :  { %p149_p3 = scmp.ne.s32.totalorder %s22_s13, %s148_s21  ;;  %p154_p5 = scmp.lt.s32.totalorder %s148_s21, %s148_s21 }
   0xd   :  { %p155_p6 = por %p154_p5, %p153_p4 }
   0xf   :  { %p156_p7 = pnand %p155_p6, %p149_p3 }
  0x11   :  { %159 = shalt.err (!%p156_p7)
}
  0x12   :  { %s235_s22 = smov 128   ;;  %s236_s23 = smov 8  }
  0x13   :  { %27 = dma.hbm_to_vmem [thread:$0]  %s328_s0, 256, %s22_s13, [#allocation3], %s235_s22, %s235_s22, %s236_s23  }
  0x14   :  { %s237_s26 = smov [#allocation5]   ;;  %s160_s30 = scalar_lea.hbm %s329_s1, 256 }
  0x15   :  { %s36_s27 = sshll.u32 %s237_s26, 4  ;;  %p161_p8 = scmp.ne.s32.totalorder %s329_s1, %s160_s30  ;;  %s37_s27 = int_to_ptr.vmem [resolvable:$true] %s36_s27 }
  0x16   :  { %p164_p9 = scmp.lt.u32.totalorder %s160_s30, %s329_s1 }
  0x18   :  { %p166_p10 = pnand %p164_p9, %p161_p8 }
  0x1a   :  { %169 = shalt.err (!%p166_p10)
}
  0x1b   :  { %s170_s8 = scalar_lea.vmem %s37_s27, 256  ;;  %p175_p12 = scmp.lt.s32.totalorder %s37_s27, %s37_s27 }
  0x1c   :  { %p171_p11 = scmp.ne.s32.totalorder %s37_s27, %s170_s8  ;;  %p176_p13 = scmp.lt.s32.totalorder %s170_s8, %s170_s8 }
  0x1e   :  { %p177_p0 = por %p176_p13, %p175_p12 }
  0x20   :  { %p178_p1 = pnand %p177_p0, %p171_p11 }
  0x22   :  { %181 = shalt.err (!%p178_p1)
}
  0x23   :  { %42 = dma.hbm_to_vmem [thread:$0]  %s329_s1, 256, %s37_s27, [#allocation6], %s235_s22, %s235_s22, %s236_s23  }
  0x24   :  { %226 = dma.done.wait [#allocation3], 256  }
  0x25   :  { %227 = vsyncadd [#allocation3], 4294967040 }
  0x26   :  { %228 = dma.done.wait [#allocation6], 256  }
  0x27   :  { %229 = vsyncadd [#allocation6], 4294967040  ;;  %v51_v0 = vld [vmem:[#allocation2] sm:$0xff]  ;;  %v55_v1 = vld [vmem:[#allocation5] sm:$0xff]  ;;  %s238_s10 = smov [#allocation8]   ;;  %v239_v4 = vmov 0.0  }
  0x28   :  { %v52_v2 = vld [vmem:[#allocation2 + $0x8] sm:$0xff]  ;;  %vm53_vm0 = vcmp.gt.f32.partialorder %v51_v0, 0.5  ;;  %vm57_vm1 = vcmp.gt.f32.partialorder %v55_v1, 0.5  ;;  %v56_v3 = vld [vmem:[#allocation5 + $0x8] sm:$0xff]  ;;  %s110_s11 = sshll.u32 %s238_s10, 4  ;;  %s240_s12 = smov [#allocation7]   ;;  %s111_s11 = int_to_ptr.vmem [resolvable:$true] %s110_s11 }
  0x29   :  { %vm54_vm2 = vcmp.gt.f32.partialorder %v52_v2, 0.5  ;;  %vm59_vm3 = vmxor %vm57_vm1, %vm53_vm0  ;;  %vm58_vm4 = vcmp.gt.f32.partialorder %v56_v3, 0.5  ;;  %v127_v5 = vsel %vm57_vm1, 1.0, %v239_v4  ;;  %s98_s13 = sshll.u32 %s240_s12, 4  ;;  %s182_s1 = scalar_lea.vmem %s111_s11, 256  ;;  %s291_s13 = int_to_ptr.vmem [resolvable:$true] %s98_s13 }
  0x2a   :  { %v129_v6 = vsel %vm59_vm3, 1.0, %v239_v4  ;;  %vm60_vm5 = vmxor %vm58_vm4, %vm54_vm2  ;;  %v128_v7 = vsel %vm58_vm4, 1.0, %v239_v4  ;;  %91 = vst [vmem:[#allocation8] sm:$0xff] %v127_v5  ;;  %p183_p2 = scmp.ne.s32.totalorder %s111_s11, %s182_s1  ;;  %p187_p3 = scmp.lt.s32.totalorder %s111_s11, %s111_s11 }
  0x2b   :  { %v130_v8 = vsel %vm60_vm5, 1.0, %v239_v4  ;;  %85 = vst [vmem:[#allocation7] sm:$0xff] %v129_v6  ;;  %92 = vst [vmem:[#allocation8 + $0x8] sm:$0xff] %v128_v7  ;;  %p188_p4 = scmp.lt.s32.totalorder %s182_s1, %s182_s1 }
  0x2c   :  { %86 = vst [vmem:[#allocation7 + $0x8] sm:$0xff] %v130_v8 }
  0x2d   :  { %p189_p5 = por %p188_p4, %p187_p3 }
  0x2f   :  { %p190_p6 = pnand %p189_p5, %p183_p2 }
  0x31   :  { %193 = shalt.err (!%p190_p6)
}
  0x32   :  { %s194_s16 = scalar_lea.hbm %s331_s3, 256 }
  0x33   :  { %p195_p7 = scmp.ne.s32.totalorder %s331_s3, %s194_s16  ;;  %p198_p8 = scmp.lt.u32.totalorder %s194_s16, %s331_s3 }
  0x35   :  { %p200_p9 = pnand %p198_p8, %p195_p7 }
  0x37   :  { %203 = shalt.err (!%p200_p9)
}
  0x38   :  { %116 = dma.vmem_to_hbm [thread:$0]  %s111_s11, 256, %s331_s3, [#allocation9], %s235_s22, %s235_s22, %s236_s23  }
  0x39   :  { %s204_s25 = scalar_lea.vmem %s291_s13, 256  ;;  %p209_p11 = scmp.lt.s32.totalorder %s291_s13, %s291_s13 }
  0x3a   :  { %p205_p10 = scmp.ne.s32.totalorder %s291_s13, %s204_s25  ;;  %p210_p12 = scmp.lt.s32.totalorder %s204_s25, %s204_s25 }
  0x3c   :  { %p211_p13 = por %p210_p12, %p209_p11 }
  0x3e   :  { %p212_p0 = pnand %p211_p13, %p205_p10 }
  0x40   :  { %215 = shalt.err (!%p212_p0)
}
  0x41   :  { %s216_s28 = scalar_lea.hbm %s330_s2, 256 }
  0x42   :  { %p217_p1 = scmp.ne.s32.totalorder %s330_s2, %s216_s28  ;;  %p220_p2 = scmp.lt.u32.totalorder %s216_s28, %s330_s2 }
  0x44   :  { %p222_p3 = pnand %p220_p2, %p217_p1 }
  0x46   :  { %225 = shalt.err (!%p222_p3)
}
  0x47   :  { %104 = dma.vmem_to_hbm [thread:$0]  %s291_s13, 256, %s330_s2, [#allocation4], %s235_s22, %s235_s22, %s236_s23  }
  0x48   :  { %230 = dma.done.wait [#allocation4], 256  }
  0x49   :  { %231 = vsyncadd [#allocation4], 4294967040 }
  0x4a   :  { %232 = dma.done.wait [#allocation9], 256  }
  0x4b   :  { %233 = vsyncadd [#allocation9], 4294967040 }
  0x4c   :  { %123 = vsyncpa [#allocation3], 1 }
  0x4d   :  { %124 = vsyncpa [#allocation6], 1 }
  0x4e   :  { %125 = vsyncpa [#allocation4], 1 }
  0x4f   :  { %126 = vsyncpa [#allocation9], 1 }

</bundles_post_ra>
